<compile_context>
chip_gen: v5e
topology: v5e:2x2
jax: 0.10.0
libtpu: 0.0.40
codegen_flags: <defaults>
</compile_context>

<pallas_src>
import jax
import jax.numpy as jnp
from jax.experimental import pallas as pl
from jax.experimental.pallas import tpu as pltpu


_VMEM_LIMIT_BYTES = 48 * 1024 * 1024      # <= v7x 64 MiB/TC, << v5e/v6e 128 MiB
_RESIDENT_B_BUDGET = 16 * 1024 * 1024     # max bytes for a full-K resident B block


# ----------------------------------------------------------------------------- helpers
def _round_up(x: int, m: int) -> int:
    return ((x + m - 1) // m) * m


def _largest_divisor_tile(dim: int, target: int) -> int:
    """Largest multiple of 128 <= target that divides dim (dim % 128 == 0)."""
    t = min(target, dim)
    t = (t // 128) * 128
    while dim % t:
        t -= 128
    return t


def _choose_hop_tiling(n: int):
    """Tiling for the (Np, Np) @ (Np, F) hop matmul.

    Tiles are chosen first (512 / 1024 targets from the HBM-roofline sweep) and
    Np is padded UP to a multiple of the tiles; a few zero-padded rows are far
    cheaper than collapsing to 128-wide tiles.  If padding would waste >12.5%
    we fall back to exact divisors of the 128-padded dim instead."""
    n128 = _round_up(n, 128)
    tm = min(512, n128)
    tk = min(1024, n128)
    if tk % tm:                      # keep tm | tk so one Np serves both
        tk = _round_up(tk, tm)
    np_pad = _round_up(n128, tk)
    if np_pad * 8 > n128 * 9:        # >12.5% padding waste -> use exact divisors
        np_pad = n128
        tk = _largest_divisor_tile(np_pad, 1024)
        tm = _largest_divisor_tile(np_pad, 512)
    # v7x megacore: keep >= 2 row tiles so both TensorCores get work.
    if np_pad // tm < 2 and np_pad >= 256:
        tm = np_pad // 2
    return np_pad, tm, tk


# ----------------------------------------------------------------------------- kernels
def _make_matmul_kernel(use_acc: bool, resident_b: bool, tk: int):
    """Tiled matmul step.  If resident_b, b_ref holds the full reduction dim and
    is sliced in-kernel (h stays VMEM-resident; no HBM re-reads per row tile).
    If use_acc is False (f32 output), accumulate directly into o_ref."""

    def _b_tile(b_ref):
        if resident_b:
            off = pl.multiple_of(pl.program_id(2) * tk, tk)
            return b_ref[pl.ds(off, tk), :]
        return b_ref[...]

    if use_acc:
        def kernel(a_ref, b_ref, o_ref, acc_ref):
            k = pl.program_id(2)

            @pl.when(k == 0)
            def _init():
                acc_ref[...] = jnp.zeros_like(acc_ref)

            acc_ref[...] += jnp.dot(a_ref[...], _b_tile(b_ref),
                                    preferred_element_type=jnp.float32)

            @pl.when(k == pl.num_programs(2) - 1)
            def _store():
                o_ref[...] = acc_ref[...].astype(o_ref.dtype)

        return kernel

    def kernel(a_ref, b_ref, o_ref):
        @pl.when(pl.program_id(2) == 0)
        def _init():
            o_ref[...] = jnp.zeros_like(o_ref)

        o_ref[...] += jnp.dot(a_ref[...], _b_tile(b_ref),
                              preferred_element_type=jnp.float32)

    return kernel


def _tiled_matmul(a, b, *, out_dtype, tm, tn, tk):
    """C = A @ B with a tiled, double-buffered Pallas kernel (f32 accumulation).

    Caller guarantees tm | M, tn | N, tk | K (all multiples of 128/8 as needed).
    The reduction axis is last and 'arbitrary'; row/col axes are 'parallel'."""
    M, Kd = a.shape
    Kd2, N = b.shape
    assert Kd == Kd2, (a.shape, b.shape)
    assert M % tm == 0 and N % tn == 0 and Kd % tk == 0, (a.shape, b.shape, tm, tn, tk)

    out_dtype = jnp.dtype(out_dtype)
    use_acc = out_dtype != jnp.dtype(jnp.float32)
    resident_b = Kd * tn * b.dtype.itemsize <= _RESIDENT_B_BUDGET

    grid = (M // tm, N // tn, Kd // tk)

    if resident_b:
        b_spec = pl.BlockSpec((Kd, tn), lambda i, j, k: (0, j))
    else:
        b_spec = pl.BlockSpec((tk, tn), lambda i, j, k: (k, j))

    scratch = [pltpu.VMEM((tm, tn), jnp.float32)] if use_acc else []

    return pl.pallas_call(
        _make_matmul_kernel(use_acc, resident_b, tk),
        out_shape=jax.ShapeDtypeStruct((M, N), out_dtype),
        grid_spec=pltpu.PrefetchScalarGridSpec(
            num_scalar_prefetch=0,
            grid=grid,
            in_specs=[pl.BlockSpec((tm, tk), lambda i, j, k: (i, k)), b_spec],
            out_specs=pl.BlockSpec((tm, tn), lambda i, j, k: (i, j)),
            scratch_shapes=scratch,
        ),
        compiler_params=pltpu.CompilerParams(
            dimension_semantics=("parallel", "parallel", "arbitrary"),
            vmem_limit_bytes=_VMEM_LIMIT_BYTES,
        ),
    )(a, b)


# ----------------------------------------------------------------------------- forward
def sgc_forward(x, edge_index, weight_t, edge_weight=None, *, K=2,
                prop_dtype=jnp.bfloat16):
    """x: (N, F_in); edge_index: (2, E) int32 [src; dst]; weight_t: (F_in, F_out)
    (Linear weight pre-transposed).  prop_dtype: operand dtype of the hop
    matmuls / adjacency (bf16 default; accumulation is always f32).  Validate
    bf16 per dataset; pass jnp.float32 for the exact path."""
    f32 = jnp.float32
    N, F_in = x.shape
    F_out = weight_t.shape[1]
    E = edge_index.shape[1]

    src = edge_index[0].astype(jnp.int32)
    dst = edge_index[1].astype(jnp.int32)
    if edge_weight is None:
        edge_weight = jnp.ones((E,), f32)
    edge_weight = edge_weight.astype(f32)

    # TODO(synk): nn.Dropout(p=0.0) is an identity at inference; no kernel work.

    # ---- gcn_norm at O(E)/O(N) cost (PyG add_remaining_self_loops semantics:
    #      existing self-loop weights are kept, missing loops filled with 1.0) ----
    is_loop = src == dst
    w_off = jnp.where(is_loop, 0.0, edge_weight)             # off-diagonal edges
    diag = jnp.ones((N,), f32)                                # fill_value = 1.0
    diag = diag.at[jnp.where(is_loop, src, N)].set(edge_weight, mode="drop")
    deg = jnp.zeros((N,), f32).at[dst].add(w_off) + diag      # in-degree incl. loop
    d_inv_sqrt = jnp.where(deg > 0.0, jax.lax.rsqrt(deg), 0.0)
    norm_off = d_inv_sqrt[src] * w_off * d_inv_sqrt[dst]
    norm_diag = d_inv_sqrt * d_inv_sqrt * diag

    # ---- tiles first, then pad dims up to tile multiples (lane-dense, full MXU) ----
    Np, tm, tk_hop = _choose_hop_tiling(N)
    Fip = _round_up(F_in, 128)
    Fop = _round_up(F_out, 128)
    project_first = F_out <= F_in              # SGC is linear: (A^K X) W == A^K (X W)
    Fh = Fop if project_first else Fip         # feature width during the hops
    tn_hop = _largest_divisor_tile(Fh, 512)
    tn_proj = _largest_divisor_tile(Fop, 512)
    tk_proj = _largest_divisor_tile(Fip, 1024)

    # ---- normalized adjacency: one scatter into a padded buffer already in
    #      prop_dtype (single (Np, Np) materialization, no extra cast pass) ----
    a_hat = jnp.zeros((Np, Np), prop_dtype)
    a_hat = a_hat.at[dst, src].add(norm_off.astype(prop_dtype))
    nodes = jnp.arange(N, dtype=jnp.int32)
    a_hat = a_hat.at[nodes, nodes].add(norm_diag.astype(prop_dtype))

    x_pad = jnp.zeros((Np, Fip), f32).at[:N, :F_in].set(x.astype(f32))
    w_pad = jnp.zeros((Fip, Fop), f32).at[:F_in, :F_out].set(weight_t.astype(f32))

    if project_first:
        # Project at full precision, emit in prop_dtype for the hops.
        h = _tiled_matmul(x_pad, w_pad, out_dtype=prop_dtype,
                          tm=tm, tn=tn_proj, tk=tk_proj)
        for hop in range(K):
            last = hop == K - 1
            h = _tiled_matmul(a_hat, h,
                              out_dtype=(f32 if last else prop_dtype),
                              tm=tm, tn=tn_hop, tk=tk_hop)
        out = h
    else:
        h = x_pad.astype(prop_dtype)
        for _ in range(K):
            h = _tiled_matmul(a_hat, h, out_dtype=prop_dtype,
                              tm=tm, tn=tn_hop, tk=tk_hop)
        out = _tiled_matmul(h, w_pad.astype(prop_dtype), out_dtype=f32,
                            tm=tm, tn=tn_proj, tk=tk_proj)

    return out[:N, :F_out].astype(x.dtype)


# ----------------------------------------------------------------------------- reference
def sgc_reference(x, edge_index, weight_t, edge_weight=None, *, K=2):
    """Pure-JAX dense reference in the original propagate-then-project order."""
    N = x.shape[0]
    src, dst = edge_index[0], edge_index[1]
    if edge_weight is None:
        edge_weight = jnp.ones((edge_index.shape[1],), jnp.float32)
    edge_weight = edge_weight.astype(jnp.float32)
    is_loop = src == dst
    w_off = jnp.where(is_loop, 0.0, edge_weight)
    diag = jnp.ones((N,), jnp.float32)
    diag = diag.at[jnp.where(is_loop, src, N)].set(edge_weight, mode="drop")
    adj = jnp.zeros((N, N), jnp.float32).at[dst, src].add(w_off) + jnp.diag(diag)
    deg = adj.sum(axis=1, keepdims=True)
    dis = jnp.where(deg > 0.0, jax.lax.rsqrt(deg), 0.0)
    a_hat = dis * adj * dis.T
    h = x.astype(jnp.float32)
    for _ in range(K):
        h = a_hat @ h
    return h @ weight_t.astype(jnp.float32)


# ----------------------------------------------------------------------------- demo
if __name__ == "__main__":
    key = jax.random.PRNGKey(0)
    k_x, k_e1, k_e2, k_w, k_ew = jax.random.split(key, 5)

    N = 32          # number of graph nodes
    F_IN = 16       # in_features
    F_OUT = 8       # out_features
    E = 64          # number of directed edges
    K = 2

    x = jax.random.normal(k_x, (N, F_IN), dtype=jnp.float32)
    src = jax.random.randint(k_e1, (E,), 0, N, dtype=jnp.int32)
    dst = jax.random.randint(k_e2, (E,), 0, N, dtype=jnp.int32)
    # Force one explicit self-loop to exercise add_remaining_self_loops handling.
    src = src.at[0].set(7)
    dst = dst.at[0].set(7)
    edge_index = jnp.stack([src, dst], axis=0)   # (2, E)

    # SGConv's Linear(in, out, bias=False) weight is (F_OUT, F_IN); store transpose.
    scale = jnp.sqrt(6.0 / (F_IN + F_OUT))
    weight_t = jax.random.uniform(k_w, (F_IN, F_OUT), minval=-scale, maxval=scale,
                                  dtype=jnp.float32)
    edge_weight = jax.random.uniform(k_ew, (E,), minval=0.5, maxval=1.5,
                                     dtype=jnp.float32)

    # --- unweighted graph, default bf16 propagation (bandwidth path) ---
    ref = sgc_reference(x, edge_index, weight_t, K=K)
    out = jax.block_until_ready(sgc_forward(x, edge_index, weight_t, K=K))
    assert out.shape == (N, F_OUT)
    assert jnp.allclose(out, ref, atol=5e-2, rtol=5e-2), "bf16 mismatch vs reference"

    # --- weighted graph, f32 propagation (exact path) ---
    ref_w = sgc_reference(x, edge_index, weight_t, edge_weight, K=K)
    out_w = jax.block_until_ready(
        sgc_forward(x, edge_index, weight_t, edge_weight, K=K,
                    prop_dtype=jnp.float32))
    assert out_w.shape == (N, F_OUT)
    assert jnp.allclose(out_w, ref_w, atol=1e-4, rtol=1e-4), "f32 mismatch vs reference"

    print("KERNEL_OK")
</pallas_src>

<mosaic_0001>
module attributes {stable_mosaic.version = 11 : i64} {
  func.func @kernel(%arg0: i32, %arg1: i32, %arg2: i32, %arg3: memref<128x128xf32, #tpu.memory_space<vmem>>, %arg4: memref<128x128xf32, #tpu.memory_space<vmem>>, %arg5: memref<128x128xbf16, #tpu.memory_space<vmem>>, %arg6: memref<128x128xf32, #tpu.memory_space<vmem>>) attributes {dimension_semantics = [#tpu.dimension_semantics<parallel>, #tpu.dimension_semantics<parallel>, #tpu.dimension_semantics<arbitrary>], iteration_bounds = array<i64: 1, 1, 1>, scalar_prefetch = 0 : i64, scratch_operands = 1 : i64, tpu.core_type = #tpu.core_type<tc>, window_params = [{transform_indices = @transform_0, window_bounds = array<i64: 128, 128>}, {transform_indices = @transform_1, window_bounds = array<i64: 128, 128>}, {transform_indices = @transform_2, window_bounds = array<i64: 128, 128>}]} {
    %c0_i32 = arith.constant 0 : i32
    %0 = arith.cmpi eq, %arg2, %c0_i32 : i32
    %1 = arith.extui %0 : i1 to i32
    %c0_i32_0 = arith.constant 0 : i32
    %2 = arith.cmpi ne, %1, %c0_i32_0 : i32
    scf.if %2 {
      %cst_9 = arith.constant 0.000000e+00 : f32
      %15 = vector.broadcast %cst_9 : f32 to vector<128x128xf32>
      %c0_10 = arith.constant 0 : index
      %c0_11 = arith.constant 0 : index
      %16 = vector.load %arg6[%c0_10, %c0_11] : memref<128x128xf32, #tpu.memory_space<vmem>>, vector<128x128xf32>
      tpu.vector_store %arg6[%c0_10, %c0_11], %15 {strides = array<i32>} : memref<128x128xf32, #tpu.memory_space<vmem>>, vector<128x128xf32>,
    } else {
    }
    %c0 = arith.constant 0 : index
    %c0_1 = arith.constant 0 : index
    %3 = vector.load %arg6[%c0, %c0_1] : memref<128x128xf32, #tpu.memory_space<vmem>>, vector<128x128xf32>
    %c0_2 = arith.constant 0 : index
    %c0_3 = arith.constant 0 : index
    %4 = vector.load %arg3[%c0_2, %c0_3] : memref<128x128xf32, #tpu.memory_space<vmem>>, vector<128x128xf32>
    %c128_i32 = arith.constant 128 : i32
    %5 = arith.muli %arg2, %c128_i32 : i32
    %6 = tpu.assume_multiple %5, 128 : i32
    %7 = arith.index_cast %6 : i32 to index
    %c0_4 = arith.constant 0 : index
    %8 = vector.load %arg4[%7, %c0_4] : memref<128x128xf32, #tpu.memory_space<vmem>>, vector<128x128xf32>
    %cst = arith.constant dense<0.000000e+00> : vector<128x128xf32>
    %9 = tpu.matmul %4, %8, %cst {dimension_numbers = #tpu.dot_dimension_numbers<[1], [0], [0], [1], [0, 0, 1, 1], [], []>} : vector<128x128xf32>, vector<128x128xf32>, vector<128x128xf32> -> vector<128x128xf32>
    %10 = arith.addf %3, %9 : vector<128x128xf32>
    %c0_5 = arith.constant 0 : index
    %c0_6 = arith.constant 0 : index
    %11 = vector.load %arg6[%c0_5, %c0_6] : memref<128x128xf32, #tpu.memory_space<vmem>>, vector<128x128xf32>
    tpu.vector_store %arg6[%c0_5, %c0_6], %10 {strides = array<i32>} : memref<128x128xf32, #tpu.memory_space<vmem>>, vector<128x128xf32>,
    %c0_i32_7 = arith.constant 0 : i32
    %12 = arith.cmpi eq, %arg2, %c0_i32_7 : i32
    %13 = arith.extui %12 : i1 to i32
    %c0_i32_8 = arith.constant 0 : i32
    %14 = arith.cmpi ne, %13, %c0_i32_8 : i32
    scf.if %14 {
      %c0_9 = arith.constant 0 : index
      %c0_10 = arith.constant 0 : index
      %15 = vector.load %arg6[%c0_9, %c0_10] : memref<128x128xf32, #tpu.memory_space<vmem>>, vector<128x128xf32>
      %16 = arith.truncf %15 : vector<128x128xf32> to vector<128x128xbf16>
      %c0_11 = arith.constant 0 : index
      %c0_12 = arith.constant 0 : index
      %17 = vector.load %arg5[%c0_11, %c0_12] : memref<128x128xbf16, #tpu.memory_space<vmem>>, vector<128x128xbf16>
      tpu.vector_store %arg5[%c0_11, %c0_12], %16 {strides = array<i32>} : memref<128x128xbf16, #tpu.memory_space<vmem>>, vector<128x128xbf16>,
    } else {
    }
    return
  }
  func.func @transform_0(%arg0: i32, %arg1: i32, %arg2: i32) -> (i32, i32) {
    %c0_i32 = arith.constant 0 : i32
    return %arg0, %arg2 : i32, i32
  }
  func.func @transform_1(%arg0: i32, %arg1: i32, %arg2: i32) -> (i32, i32) {
    %c0_i32 = arith.constant 0 : i32
    %c0_i32_0 = arith.constant 0 : i32
    return %c0_i32, %arg1 : i32, i32
  }
  func.func @transform_2(%arg0: i32, %arg1: i32, %arg2: i32) -> (i32, i32) {
    %c0_i32 = arith.constant 0 : i32
    return %arg0, %arg1 : i32, i32
  }
}

</mosaic_0001>

<bundles_post_ra>
// kernel: tpu_custom_call.1
= control target key start
LH: loop header
LB: loop body
LE: loop exit
PB: predicated region body
PF: predicated region fallthrough
CT: control target
= control target key end

     0   :  { %7 = vsyncpa [#allocation4], 0  ;;  %s493_s0 = inlined_call_operand.hbm [shape: f32[128,128], index: 0, kind: input, shape index: {}]   ;;  %s494_s1 = inlined_call_operand.hbm [shape: f32[128,128], index: 1, kind: input, shape index: {}]   ;;  %s495_s2 = inlined_call_operand.hbm [shape: bf16[128,128], index: 2, kind: output, shape index: {}]  }
   0x1   :  { %8 = vsyncpa [#allocation7], 0 }
   0x2   :  { %9 = vsyncpa [#allocation5], 0  ;;  %s14_s11 = sshll.u32 %s493_s0, 4  ;;  %s462_s12 = smov [#allocation3]   ;;  %s15_s11 = int_to_ptr.hbm [resolvable:$true] %s14_s11 }
   0x3   :  { %s16_s13 = sshll.u32 %s462_s12, 4  ;;  %s27_s16 = sshll.u32 %s494_s1, 4  ;;  %s17_s13 = int_to_ptr.vmem [resolvable:$true] %s16_s13  ;;  %s28_s16 = int_to_ptr.hbm [resolvable:$true] %s27_s16 }
   0x4   :  { %s463_s17 = smov 128   ;;  %s464_s18 = smov 8  }
   0x5   :  { %22 = dma.hbm_to_vmem [thread:$0]  %s15_s11, 2048, %s17_s13, [#allocation4], %s463_s17, %s463_s17, %s464_s18  }
   0x6   :  { %s465_s19 = smov [#allocation6]  }
   0x7   :  { %s29_s20 = sshll.u32 %s465_s19, 4  ;;  %s30_s20 = int_to_ptr.vmem [resolvable:$true] %s29_s20 }
   0x8   :  { %35 = dma.hbm_to_vmem [thread:$0]  %s28_s16, 2048, %s30_s20, [#allocation7], %s463_s17, %s463_s17, %s464_s18  }
   0x9   :  { %456 = dma.done.wait [#allocation4], 2048  }
   0xa   :  { %457 = vsyncadd [#allocation4], 4294965248 }
   0xb   :  { %458 = dma.done.wait [#allocation7], 2048  }
   0xc   :  { %459 = vsyncadd [#allocation7], 4294965248  ;;  %v113_v0 = vld [vmem:[#allocation6 + $0x78] sm:$0xff]  ;;  %v112_v1 = vld [vmem:[#allocation6 + $0x70] sm:$0xff]  ;;  %s466_s0 = smov [#allocation8]   ;;  %s268_s23 = sshll.u32 %s495_s2, 4  ;;  %s269_s23 = int_to_ptr.hbm [resolvable:$true] %s268_s23 }
   0xd   :  { %114 = vmatpush.msra.mxu0 %v113_v0  ;;  %329 = vmatpush.msra.mxu1 %v113_v0  ;;  %v111_v2 = vld [vmem:[#allocation6 + $0x68] sm:$0xff]  ;;  %v110_v3 = vld [vmem:[#allocation6 + $0x60] sm:$0xff]  ;;  %v109_v4 = vld [vmem:[#allocation6 + $0x58] sm:$0xff]  ;;  %s266_s1 = sshll.u32 %s466_s0, 4  ;;  %s467_s24 = smov 64   ;;  %s267_s1 = int_to_ptr.vmem [resolvable:$true] %s266_s1 }
   0xe   :  { %330 = vmatpush.msra.mxu2 %v113_v0  ;;  %331 = vmatpush.msra.mxu3 %v113_v0  ;;  %v108_v5 = vld [vmem:[#allocation6 + $0x50] sm:$0xff]  ;;  %v107_v6 = vld [vmem:[#allocation6 + $0x48] sm:$0xff]  ;;  %v106_v7 = vld [vmem:[#allocation6 + $0x40] sm:$0xff]  ;;  %s468_s25 = smov 4  }
   0xf   :  { %115 = vmatpush.msra.mxu0 %v112_v1  ;;  %332 = vmatpush.msra.mxu1 %v112_v1  ;;  %v105_v8 = vld [vmem:[#allocation6 + $0x38] sm:$0xff]  ;;  %v104_v9 = vld [vmem:[#allocation6 + $0x30] sm:$0xff]  ;;  %v103_v10 = vld [vmem:[#allocation6 + $0x28] sm:$0xff] }
  0x10   :  { %333 = vmatpush.msra.mxu2 %v112_v1  ;;  %334 = vmatpush.msra.mxu3 %v112_v1  ;;  %v102_v11 = vld [vmem:[#allocation6 + $0x20] sm:$0xff]  ;;  %v101_v12 = vld [vmem:[#allocation6 + $0x18] sm:$0xff]  ;;  %v100_v13 = vld [vmem:[#allocation6 + $0x10] sm:$0xff] }
  0x11   :  { %116 = vmatpush.msra.mxu0 %v111_v2  ;;  %335 = vmatpush.msra.mxu1 %v111_v2  ;;  %v99_v14 = vld [vmem:[#allocation6 + $0x8] sm:$0xff]  ;;  %v98_v15 = vld [vmem:[#allocation6] sm:$0xff]  ;;  %v82_v24 = vld [vmem:[#allocation3 + $0x10] sm:$0xff] }
  0x12   :  { %336 = vmatpush.msra.mxu2 %v111_v2  ;;  %337 = vmatpush.msra.mxu3 %v111_v2  ;;  %v80_v16 = vld [vmem:[#allocation3] sm:$0xff]  ;;  %v81_v20 = vld [vmem:[#allocation3 + $0x8] sm:$0xff]  ;;  %v86_v25 = vld [vmem:[#allocation3 + $0x30] sm:$0xff] }
  0x13   :  { %117 = vmatpush.msra.mxu0 %v110_v3  ;;  %338 = vmatpush.msra.mxu1 %v110_v3  ;;  %v84_v17 = vld [vmem:[#allocation3 + $0x20] sm:$0xff]  ;;  %v85_v21 = vld [vmem:[#allocation3 + $0x28] sm:$0xff]  ;;  %v90_v26 = vld [vmem:[#allocation3 + $0x50] sm:$0xff] }
  0x14   :  { %339 = vmatpush.msra.mxu2 %v110_v3  ;;  %340 = vmatpush.msra.mxu3 %v110_v3  ;;  %v88_v18 = vld [vmem:[#allocation3 + $0x40] sm:$0xff]  ;;  %v89_v22 = vld [vmem:[#allocation3 + $0x48] sm:$0xff]  ;;  %v94_v27 = vld [vmem:[#allocation3 + $0x70] sm:$0xff] }
  0x15   :  { %118 = vmatpush.msra.mxu0 %v109_v4  ;;  %341 = vmatpush.msra.mxu1 %v109_v4  ;;  %v92_v19 = vld [vmem:[#allocation3 + $0x60] sm:$0xff]  ;;  %v93_v23 = vld [vmem:[#allocation3 + $0x68] sm:$0xff]  ;;  %v83_v28 = vld [vmem:[#allocation3 + $0x18] sm:$0xff] }
  0x16   :  { %342 = vmatpush.msra.mxu2 %v109_v4  ;;  %343 = vmatpush.msra.mxu3 %v109_v4  ;;  %v87_v29 = vld [vmem:[#allocation3 + $0x38] sm:$0xff] }
  0x17   :  { %119 = vmatpush.msra.mxu0 %v108_v5  ;;  %344 = vmatpush.msra.mxu1 %v108_v5  ;;  %v91_v30 = vld [vmem:[#allocation3 + $0x58] sm:$0xff] }
  0x18   :  { %345 = vmatpush.msra.mxu2 %v108_v5  ;;  %346 = vmatpush.msra.mxu3 %v108_v5  ;;  %v95_v31 = vld [vmem:[#allocation3 + $0x78] sm:$0xff] }
  0x19   :  { %120 = vmatpush.msra.mxu0 %v107_v6  ;;  %347 = vmatpush.msra.mxu1 %v107_v6 }
  0x1a   :  { %348 = vmatpush.msra.mxu2 %v107_v6  ;;  %349 = vmatpush.msra.mxu3 %v107_v6 }
  0x1b   :  { %121 = vmatpush.msra.mxu0 %v106_v7  ;;  %350 = vmatpush.msra.mxu1 %v106_v7 }
  0x1c   :  { %351 = vmatpush.msra.mxu2 %v106_v7  ;;  %352 = vmatpush.msra.mxu3 %v106_v7 }
  0x1d   :  { %122 = vmatpush.msra.mxu0 %v105_v8  ;;  %353 = vmatpush.msra.mxu1 %v105_v8 }
  0x1e   :  { %354 = vmatpush.msra.mxu2 %v105_v8  ;;  %355 = vmatpush.msra.mxu3 %v105_v8 }
  0x1f   :  { %123 = vmatpush.msra.mxu0 %v104_v9  ;;  %356 = vmatpush.msra.mxu1 %v104_v9 }
  0x20   :  { %357 = vmatpush.msra.mxu2 %v104_v9  ;;  %358 = vmatpush.msra.mxu3 %v104_v9 }
  0x21   :  { %124 = vmatpush.msra.mxu0 %v103_v10  ;;  %359 = vmatpush.msra.mxu1 %v103_v10 }
  0x22   :  { %360 = vmatpush.msra.mxu2 %v103_v10  ;;  %361 = vmatpush.msra.mxu3 %v103_v10 }
  0x23   :  { %125 = vmatpush.msra.mxu0 %v102_v11  ;;  %362 = vmatpush.msra.mxu1 %v102_v11 }
  0x24   :  { %363 = vmatpush.msra.mxu2 %v102_v11  ;;  %364 = vmatpush.msra.mxu3 %v102_v11 }
  0x25   :  { %126 = vmatpush.msra.mxu0 %v101_v12  ;;  %365 = vmatpush.msra.mxu1 %v101_v12 }
  0x26   :  { %366 = vmatpush.msra.mxu2 %v101_v12  ;;  %367 = vmatpush.msra.mxu3 %v101_v12 }
  0x27   :  { %127 = vmatpush.msra.mxu0 %v100_v13  ;;  %368 = vmatpush.msra.mxu1 %v100_v13 }
  0x28   :  { %369 = vmatpush.msra.mxu2 %v100_v13  ;;  %370 = vmatpush.msra.mxu3 %v100_v13 }
  0x29   :  { %128 = vmatpush.msra.mxu0 %v99_v14  ;;  %371 = vmatpush.msra.mxu1 %v99_v14 }
  0x2a   :  { %372 = vmatpush.msra.mxu2 %v99_v14  ;;  %373 = vmatpush.msra.mxu3 %v99_v14 }
  0x2b   :  { %129 = vmatpush.msra.mxu0 %v98_v15  ;;  %374 = vmatpush.msra.mxu1 %v98_v15 }
  0x2c   :  { %375 = vmatpush.msra.mxu2 %v98_v15  ;;  %376 = vmatpush.msra.mxu3 %v98_v15 }
  0x2d   :  { %130 = vmatmul.f32.vlgmr.msra.gmra.mxu0 %v80_v16  ;;  %142 = vmatmul.f32.vlgmr.msra.gmra.mxu1 %v84_v17 }
  0x2e   :  { %154 = vmatmul.f32.vlgmr.msra.gmra.mxu2 %v88_v18  ;;  %166 = vmatmul.f32.vlgmr.msra.gmra.mxu3 %v92_v19 }
  0x35   :  { %133 = vmatmul.f32.gmra.mxu0 %v81_v20  ;;  %145 = vmatmul.f32.gmra.mxu1 %v85_v21 }
  0x36   :  { %157 = vmatmul.f32.gmra.mxu2 %v89_v22  ;;  %169 = vmatmul.f32.gmra.mxu3 %v93_v23 }
  0x3d   :  { %136 = vmatmul.f32.gmra.mxu0 %v82_v24  ;;  %148 = vmatmul.f32.gmra.mxu1 %v86_v25 }
  0x3e   :  { %160 = vmatmul.f32.gmra.mxu2 %v90_v26  ;;  %172 = vmatmul.f32.gmra.mxu3 %v94_v27 }
  0x45   :  { %139 = vmatmul.f32.gmra.mxu0 %v83_v28  ;;  %151 = vmatmul.f32.gmra.mxu1 %v87_v29 }
  0x46   :  { %163 = vmatmul.f32.gmra.mxu2 %v91_v30  ;;  %175 = vmatmul.f32.gmra.mxu3 %v95_v31 }
  0xaa   :  { %v131_v32 = vpop.f32.mrf.mxu0  ;;  %v143_v33 = vpop.f32.mrf.mxu1 }
  0xb1   :  { %v155_v34 = vpop.f32.mrf.mxu2  ;;  %v167_v35 = vpop.f32.mrf.mxu3 }
  0xb2   :  { %v134_v36 = vpop.f32.mrf.mxu0  ;;  %v146_v37 = vpop.f32.mrf.mxu1 }
  0xb3   :  { %v285_v38 = vpack.c.bf16 %v134_v36, %v131_v32  ;;  %v295_v39 = vpack.c.bf16 %v146_v37, %v143_v33 }
  0xb5   :  { %286 = vst [vmem:[#allocation8] sm:$0xff] %v285_v38  }
  0xb6   :  { %323 = vst [vmem:[#allocation8 + $0x10] sm:$0xff] %v295_v39  }
  0xb9   :  { %v158_v40 = vpop.f32.mrf.mxu2  ;;  %v170_v41 = vpop.f32.mrf.mxu3 }
  0xba   :  { %v305_v42 = vpack.c.bf16 %v158_v40, %v155_v34  ;;  %v315_v43 = vpack.c.bf16 %v170_v41, %v167_v35  ;;  %v137_v44 = vpop.f32.mrf.mxu0  ;;  %v149_v45 = vpop.f32.mrf.mxu1 }
  0xbc   :  { %325 = vst [vmem:[#allocation8 + $0x20] sm:$0xff] %v305_v42  }
  0xbd   :  { %327 = vst [vmem:[#allocation8 + $0x30] sm:$0xff] %v315_v43  }
  0xc1   :  { %v161_v46 = vpop.f32.mrf.mxu2  ;;  %v173_v47 = vpop.f32.mrf.mxu3 }
  0xc2   :  { %v140_v48 = vpop.f32.mrf.mxu0  ;;  %v152_v49 = vpop.f32.mrf.mxu1 }
  0xc3   :  { %v290_v50 = vpack.c.bf16 %v140_v48, %v137_v44  ;;  %v300_v51 = vpack.c.bf16 %v152_v49, %v149_v45 }
  0xc5   :  { %322 = vst [vmem:[#allocation8 + $0x8] sm:$0xff] %v290_v50  }
  0xc6   :  { %324 = vst [vmem:[#allocation8 + $0x18] sm:$0xff] %v300_v51  }
  0xc9   :  { %v164_v52 = vpop.f32.mrf.mxu2  ;;  %v176_v53 = vpop.f32.mrf.mxu3 }
  0xca   :  { %v310_v54 = vpack.c.bf16 %v164_v52, %v161_v46  ;;  %v320_v55 = vpack.c.bf16 %v176_v53, %v173_v47 }
  0xcc   :  { %326 = vst [vmem:[#allocation8 + $0x28] sm:$0xff] %v310_v54  }
  0xcd   :  { %328 = vst [vmem:[#allocation8 + $0x38] sm:$0xff] %v320_v55  }
  0xce   :  { %274 = dma.vmem_to_hbm [thread:$0]  %s267_s1, 1024, %s269_s23, [#allocation5], %s467_s24, %s467_s24, %s468_s25  }
  0xcf   :  { %460 = dma.done.wait [#allocation5], 1024  }
  0xd0   :  { %461 = vsyncadd [#allocation5], 4294966272 }
  0xd1   :  { %279 = vsyncpa [#allocation4], 1 }
  0xd2   :  { %280 = vsyncpa [#allocation7], 1 }
  0xd3   :  { %281 = vsyncpa [#allocation5], 1 }

</bundles_post_ra>
